<compile_context>
chip_gen: v7x
topology: tpu7x:2x2x1
jax: 0.10.0
libtpu: 0.0.40
codegen_flags: <defaults>
</compile_context>

<pallas_src>
import math
import functools

import jax
import jax.numpy as jnp
from jax.experimental import pallas as pl
from jax.experimental.pallas import tpu as pltpu

LOG_STD_MIN = -20.0
LOG_STD_MAX = 2.0
HALF_LOG_2PI = 0.5 * math.log(2.0 * math.pi)
LOG2 = math.log(2.0)


def _round_up(x, m):
    return (x + m - 1) // m * m


def actor_kernel(state_ref, eps_ref,
                 w1_ref, b1_ref, w2_ref, b2_ref, wh_ref, bh_ref,
                 *out_refs, action_dim, a_pad, pack_logp):
    dot_dt = w1_ref.dtype  # matmul input dtype (bf16 or f32); accumulate in f32

    x = state_ref[...]

    # a_net: Linear -> ReLU -> Linear -> ReLU   (h_acti=ReLU, o_acti=ReLU)
    h1 = jnp.dot(x.astype(dot_dt), w1_ref[...],
                 preferred_element_type=jnp.float32) + b1_ref[...]
    h1 = jnp.maximum(h1, 0.0)
    h2 = jnp.dot(h1.astype(dot_dt), w2_ref[...],
                 preferred_element_type=jnp.float32) + b2_ref[...]
    h2 = jnp.maximum(h2, 0.0)

    # fused heads: lanes [0:a_pad] = mu, lanes [a_pad:2*a_pad] = log_std
    head = jnp.dot(h2.astype(dot_dt), wh_ref[...],
                   preferred_element_type=jnp.float32) + bh_ref[...]
    mu = head[:, :a_pad]
    log_std = jnp.clip(head[:, a_pad:], LOG_STD_MIN, LOG_STD_MAX)
    std = jnp.exp(log_std)

    eps = eps_ref[...]          # padded lanes/rows are zero -> u = 0 there
    u = mu + std * eps          # reparameterized sample

    # tanh(u) and squash correction sharing one exp(-2|u|)
    au = jnp.abs(u)
    e = jnp.exp(-2.0 * au)
    t = (1.0 - e) / (1.0 + e)
    a = jnp.where(u >= 0.0, t, -t)          # == tanh(u); padded lanes -> 0

    # Normal(mu, std).log_prob(u) = -0.5*eps^2 - log_std - 0.5*log(2*pi)
    # 2*(log2 - u - softplus(-2u)) == 2*(log2 - |u| - log1p(exp(-2|u|)))
    corr = 2.0 * (LOG2 - au - jnp.log1p(e))
    logp_lane = -0.5 * eps * eps - log_std - HALF_LOG_2PI - corr
    lane = jax.lax.broadcasted_iota(jnp.int32, logp_lane.shape, 1)
    logp = jnp.sum(jnp.where(lane < action_dim, logp_lane, 0.0),
                   axis=1, keepdims=True)

    if pack_logp:
        # Single lane-dense output slab: lanes [0:action_dim] = action,
        # lane action_dim = logp (spare zero lane of the padded slab).
        (a_ref,) = out_refs
        a_ref[...] = jnp.where(lane == action_dim, logp, a)
    else:
        # Fallback when action_dim is an exact multiple of 128 (no spare lane).
        a_ref, logp_ref = out_refs
        a_ref[...] = a
        logp_ref[...] = jnp.broadcast_to(logp, logp_ref.shape)


def prepare_actor_params(params, matmul_dtype=jnp.bfloat16):
    """Pad / cast / fuse the Actor weights ONCE; reuse across forward calls."""
    S, H1 = params["w1"].shape
    H2 = params["w2"].shape[1]
    A = params["wmu"].shape[1]

    f32 = jnp.float32
    S_pad = _round_up(S, 8)          # matmul K dim / state lane dim
    H1p = _round_up(H1, 128)         # lane-align hidden widths
    H2p = _round_up(H2, 128)
    A_pad = _round_up(A, 128)        # lane-dense outputs / eps

    def pad2(x, r, c):
        return jnp.pad(x.astype(f32), ((0, r - x.shape[0]), (0, c - x.shape[1])))

    weights = dict(
        w1=pad2(params["w1"], S_pad, H1p).astype(matmul_dtype),
        b1=pad2(params["b1"], 1, H1p),
        w2=pad2(params["w2"], H1p, H2p).astype(matmul_dtype),
        b2=pad2(params["b2"], 1, H2p),
        # fused mu / log_std head
        wh=jnp.concatenate([pad2(params["wmu"], H2p, A_pad),
                            pad2(params["wls"], H2p, A_pad)],
                           axis=1).astype(matmul_dtype),
        bh=jnp.concatenate([pad2(params["bmu"], 1, A_pad),
                            pad2(params["bls"], 1, A_pad)], axis=1),
    )
    return dict(weights=weights, state_dim=S, action_dim=A,
                s_pad=S_pad, a_pad=A_pad)


def actor_forward(state, eps, prepared, *, max_block_b=512):
    """Actor forward pass (stochastic, with_logprob=True) using prepared params."""
    B, S = state.shape
    assert S == prepared["state_dim"]
    A = prepared["action_dim"]
    S_pad = prepared["s_pad"]
    A_pad = prepared["a_pad"]
    w = prepared["weights"]

    # Per-generation batch tiling: 1 grid step on single-TC chips (v5e/v6e),
    # >=2 balanced steps on 2-TC chips (v4/v5p/v7x) so "parallel" shards work.
    kind = jax.devices()[0].device_kind.lower()
    n_tc = 2 if any(tag in kind for tag in ("v4", "v5p", "v7", "7x")) else 1

    TB = min(max_block_b, _round_up(pl.cdiv(B, n_tc), 8))
    B_pad = _round_up(B, TB)
    n_steps = B_pad // TB

    pack_logp = A_pad > A    # spare padded lane available to carry logp

    f32 = jnp.float32
    state_p = jnp.pad(state.astype(f32), ((0, B_pad - B), (0, S_pad - S)))
    # Invariant: eps must be zero in padded rows/lanes (so u == 0 there).
    eps_p = jnp.pad(eps.astype(f32), ((0, B_pad - B), (0, A_pad - A)))

    kernel = functools.partial(actor_kernel, action_dim=A, a_pad=A_pad,
                               pack_logp=pack_logp)

    def tile_spec(last):
        return pl.BlockSpec((TB, last), lambda i: (i, 0))

    def full_spec(arr):
        # Constant index_map: block never changes -> stays VMEM-resident.
        return pl.BlockSpec(arr.shape, lambda i: (0, 0))

    if pack_logp:
        out_shape = jax.ShapeDtypeStruct((B_pad, A_pad), jnp.float32)
        out_specs = tile_spec(A_pad)
    else:
        out_shape = (jax.ShapeDtypeStruct((B_pad, A_pad), jnp.float32),
                     jax.ShapeDtypeStruct((B_pad, 128), jnp.float32))
        out_specs = (tile_spec(A_pad), tile_spec(128))

    # Raise the scoped VMEM limit only when a rough footprint estimate exceeds
    # the most conservative default (16 MiB on v5e); test shapes stay at None.
    weight_bytes = sum(int(x.size) * x.dtype.itemsize
                       for x in (w["w1"], w["b1"], w["w2"], w["b2"],
                                 w["wh"], w["bh"]))
    io_bytes = TB * (S_pad + 3 * A_pad) * 4
    est = 2 * (weight_bytes + io_bytes)          # double-buffering headroom
    vmem_limit = None
    if est > (16 << 20):
        vmem_limit = int(min(_round_up(est + (4 << 20), 1 << 20), 96 << 20))

    out = pl.pallas_call(
        kernel,
        grid=(n_steps,),
        out_shape=out_shape,
        in_specs=[tile_spec(S_pad), tile_spec(A_pad),
                  full_spec(w["w1"]), full_spec(w["b1"]),
                  full_spec(w["w2"]), full_spec(w["b2"]),
                  full_spec(w["wh"]), full_spec(w["bh"])],
        out_specs=out_specs,
        compiler_params=pltpu.CompilerParams(
            dimension_semantics=("parallel",),
            vmem_limit_bytes=vmem_limit),
    )(state_p, eps_p, w["w1"], w["b1"], w["w2"], w["b2"], w["wh"], w["bh"])

    if pack_logp:
        a = out[:B, :A]
        logp = out[:B, A:A + 1]
    else:
        a = out[0][:B, :A]
        logp = out[1][:B, :1]
    return a, logp


def init_actor_params(key, state_dim, action_dim, hid_shape):
    """Deterministic init (uniform(-1/sqrt(fan_in), 1/sqrt(fan_in)), like torch Linear)."""
    dims = [state_dim] + list(hid_shape)
    keys = jax.random.split(key, 8)

    def lin(kw, kb, fan_in, fan_out):
        bound = 1.0 / math.sqrt(fan_in)
        w = jax.random.uniform(kw, (fan_in, fan_out), jnp.float32, -bound, bound)
        b = jax.random.uniform(kb, (1, fan_out), jnp.float32, -bound, bound)
        return w, b

    w1, b1 = lin(keys[0], keys[1], dims[0], dims[1])
    w2, b2 = lin(keys[2], keys[3], dims[1], dims[2])
    wmu, bmu = lin(keys[4], keys[5], dims[2], action_dim)
    wls, bls = lin(keys[6], keys[7], dims[2], action_dim)
    return dict(w1=w1, b1=b1, w2=w2, b2=b2, wmu=wmu, bmu=bmu, wls=wls, bls=bls)


def actor_forward_ref(state, eps, params):
    """Pure-JAX reference mirroring the PyTorch forward."""
    h1 = jnp.maximum(state @ params["w1"] + params["b1"], 0.0)
    h2 = jnp.maximum(h1 @ params["w2"] + params["b2"], 0.0)
    mu = h2 @ params["wmu"] + params["bmu"]
    log_std = jnp.clip(h2 @ params["wls"] + params["bls"], LOG_STD_MIN, LOG_STD_MAX)
    std = jnp.exp(log_std)
    u = mu + std * eps
    a = jnp.tanh(u)
    logp_gauss = -0.5 * ((u - mu) / std) ** 2 - log_std - HALF_LOG_2PI
    corr = 2.0 * (LOG2 - u - jax.nn.softplus(-2.0 * u))
    logp = jnp.sum(logp_gauss, axis=1, keepdims=True) - jnp.sum(corr, axis=1, keepdims=True)
    return a, logp


if __name__ == "__main__":
    # small shapes consistent with Actor(state_dim, action_dim, hid_shape)
    B, STATE_DIM, ACTION_DIM = 2, 16, 4
    HID_SHAPE = (32, 32)

    key = jax.random.PRNGKey(0)
    k_param, k_state, k_eps = jax.random.split(key, 3)

    params = init_actor_params(k_param, STATE_DIM, ACTION_DIM, HID_SHAPE)
    state = jax.random.normal(k_state, (B, STATE_DIM), jnp.float32)
    eps = jax.random.normal(k_eps, (B, ACTION_DIM), jnp.float32)  # rsample noise

    a_ref, logp_ref = actor_forward_ref(state, eps, params)

    # Exact-precision path (f32 matmul inputs) — prepared once, reused.
    prepared_f32 = prepare_actor_params(params, matmul_dtype=jnp.float32)
    a, logp = actor_forward(state, eps, prepared_f32)
    jax.block_until_ready((a, logp))
    assert a.shape == (B, ACTION_DIM) and logp.shape == (B, 1)
    assert jnp.allclose(a, a_ref, atol=1e-5, rtol=1e-5), "action mismatch"
    assert jnp.allclose(logp, logp_ref, atol=1e-4, rtol=1e-4), "logp mismatch"

    # Default path: bf16 matmul inputs (f32 accumulation / epilogue) — loose tol.
    prepared_bf16 = prepare_actor_params(params)  # matmul_dtype defaults to bf16
    a_bf, logp_bf = actor_forward(state, eps, prepared_bf16)
    jax.block_until_ready((a_bf, logp_bf))
    assert bool(jnp.all(jnp.isfinite(a_bf))) and bool(jnp.all(jnp.isfinite(logp_bf)))
    assert jnp.allclose(a_bf, a_ref, atol=1e-1), "bf16 action mismatch"
    assert jnp.allclose(logp_bf, logp_ref, atol=5e-1, rtol=5e-2), "bf16 logp mismatch"

    print("KERNEL_OK")
</pallas_src>

<mosaic_0001>
module attributes {stable_mosaic.version = 11 : i64} {
  func.func @actor_kernel(%arg0: i32, %arg1: memref<8x16xf32, #tpu.memory_space<vmem>>, %arg2: memref<8x128xf32, #tpu.memory_space<vmem>>, %arg3: memref<16x128xf32, #tpu.memory_space<vmem>>, %arg4: memref<1x128xf32, #tpu.memory_space<vmem>>, %arg5: memref<128x128xf32, #tpu.memory_space<vmem>>, %arg6: memref<1x128xf32, #tpu.memory_space<vmem>>, %arg7: memref<128x256xf32, #tpu.memory_space<vmem>>, %arg8: memref<1x256xf32, #tpu.memory_space<vmem>>, %arg9: memref<8x128xf32, #tpu.memory_space<vmem>>) attributes {dimension_semantics = [#tpu.dimension_semantics<parallel>], iteration_bounds = array<i64: 1>, scalar_prefetch = 0 : i64, scratch_operands = 0 : i64, tpu.core_type = #tpu.core_type<tc>, window_params = [{transform_indices = @transform_0, window_bounds = array<i64: 8, 16>}, {transform_indices = @transform_1, window_bounds = array<i64: 8, 128>}, {pipeline_mode = #tpu.pipeline_mode<synchronous>, transform_indices = @transform_2, window_bounds = array<i64: 16, 128>}, {pipeline_mode = #tpu.pipeline_mode<synchronous>, transform_indices = @transform_3, window_bounds = array<i64: 1, 128>}, {pipeline_mode = #tpu.pipeline_mode<synchronous>, transform_indices = @transform_4, window_bounds = array<i64: 128, 128>}, {pipeline_mode = #tpu.pipeline_mode<synchronous>, transform_indices = @transform_5, window_bounds = array<i64: 1, 128>}, {pipeline_mode = #tpu.pipeline_mode<synchronous>, transform_indices = @transform_6, window_bounds = array<i64: 128, 256>}, {pipeline_mode = #tpu.pipeline_mode<synchronous>, transform_indices = @transform_7, window_bounds = array<i64: 1, 256>}, {transform_indices = @transform_8, window_bounds = array<i64: 8, 128>}]} {
    %c0 = arith.constant 0 : index
    %c0_0 = arith.constant 0 : index
    %0 = vector.load %arg1[%c0, %c0_0] : memref<8x16xf32, #tpu.memory_space<vmem>>, vector<8x16xf32>
    %c0_1 = arith.constant 0 : index
    %c0_2 = arith.constant 0 : index
    %1 = vector.load %arg3[%c0_1, %c0_2] : memref<16x128xf32, #tpu.memory_space<vmem>>, vector<16x128xf32>
    %cst = arith.constant dense<0.000000e+00> : vector<8x128xf32>
    %2 = tpu.matmul %0, %1, %cst {dimension_numbers = #tpu.dot_dimension_numbers<[1], [0], [0], [1], [0, 0, 1, 1], [], []>} : vector<8x16xf32>, vector<16x128xf32>, vector<8x128xf32> -> vector<8x128xf32>
    %c0_3 = arith.constant 0 : index
    %c0_4 = arith.constant 0 : index
    %3 = vector.load %arg4[%c0_3, %c0_4] : memref<1x128xf32, #tpu.memory_space<vmem>>, vector<1x128xf32>
    %4 = vector.broadcast %3 : vector<1x128xf32> to vector<8x128xf32>
    %5 = arith.addf %2, %4 : vector<8x128xf32>
    %cst_5 = arith.constant 0.000000e+00 : f32
    %6 = vector.broadcast %cst_5 : f32 to vector<8x128xf32>
    %7 = arith.maximumf %5, %6 : vector<8x128xf32>
    %c0_6 = arith.constant 0 : index
    %c0_7 = arith.constant 0 : index
    %8 = vector.load %arg5[%c0_6, %c0_7] : memref<128x128xf32, #tpu.memory_space<vmem>>, vector<128x128xf32>
    %cst_8 = arith.constant dense<0.000000e+00> : vector<8x128xf32>
    %9 = tpu.matmul %7, %8, %cst_8 {dimension_numbers = #tpu.dot_dimension_numbers<[1], [0], [0], [1], [0, 0, 1, 1], [], []>} : vector<8x128xf32>, vector<128x128xf32>, vector<8x128xf32> -> vector<8x128xf32>
    %c0_9 = arith.constant 0 : index
    %c0_10 = arith.constant 0 : index
    %10 = vector.load %arg6[%c0_9, %c0_10] : memref<1x128xf32, #tpu.memory_space<vmem>>, vector<1x128xf32>
    %11 = vector.broadcast %10 : vector<1x128xf32> to vector<8x128xf32>
    %12 = arith.addf %9, %11 : vector<8x128xf32>
    %cst_11 = arith.constant 0.000000e+00 : f32
    %13 = vector.broadcast %cst_11 : f32 to vector<8x128xf32>
    %14 = arith.maximumf %12, %13 : vector<8x128xf32>
    %c0_12 = arith.constant 0 : index
    %c0_13 = arith.constant 0 : index
    %15 = vector.load %arg7[%c0_12, %c0_13] : memref<128x256xf32, #tpu.memory_space<vmem>>, vector<128x256xf32>
    %cst_14 = arith.constant dense<0.000000e+00> : vector<8x256xf32>
    %16 = tpu.matmul %14, %15, %cst_14 {dimension_numbers = #tpu.dot_dimension_numbers<[1], [0], [0], [1], [0, 0, 1, 1], [], []>} : vector<8x128xf32>, vector<128x256xf32>, vector<8x256xf32> -> vector<8x256xf32>
    %c0_15 = arith.constant 0 : index
    %c0_16 = arith.constant 0 : index
    %17 = vector.load %arg8[%c0_15, %c0_16] : memref<1x256xf32, #tpu.memory_space<vmem>>, vector<1x256xf32>
    %18 = vector.broadcast %17 : vector<1x256xf32> to vector<8x256xf32>
    %19 = arith.addf %16, %18 : vector<8x256xf32>
    %20 = vector.extract_strided_slice %19 {offsets = [0, 0], sizes = [8, 128], strides = [1, 1]} : vector<8x256xf32> to vector<8x128xf32>
    %21 = vector.extract_strided_slice %19 {offsets = [0, 128], sizes = [8, 128], strides = [1, 1]} : vector<8x256xf32> to vector<8x128xf32>
    %cst_17 = arith.constant -2.000000e+01 : f32
    %cst_18 = arith.constant 2.000000e+00 : f32
    %22 = vector.broadcast %cst_17 : f32 to vector<8x128xf32>
    %23 = arith.maximumf %22, %21 : vector<8x128xf32>
    %24 = vector.broadcast %cst_18 : f32 to vector<8x128xf32>
    %25 = arith.minimumf %24, %23 : vector<8x128xf32>
    %26 = math.exp %25 : vector<8x128xf32>
    %c0_19 = arith.constant 0 : index
    %c0_20 = arith.constant 0 : index
    %27 = vector.load %arg2[%c0_19, %c0_20] : memref<8x128xf32, #tpu.memory_space<vmem>>, vector<8x128xf32>
    %28 = arith.mulf %26, %27 : vector<8x128xf32>
    %29 = arith.addf %20, %28 : vector<8x128xf32>
    %30 = math.absf %29 : vector<8x128xf32>
    %cst_21 = arith.constant -2.000000e+00 : f32
    %31 = vector.broadcast %cst_21 : f32 to vector<8x128xf32>
    %32 = arith.mulf %31, %30 : vector<8x128xf32>
    %33 = math.exp %32 : vector<8x128xf32>
    %cst_22 = arith.constant 1.000000e+00 : f32
    %34 = vector.broadcast %cst_22 : f32 to vector<8x128xf32>
    %35 = arith.subf %34, %33 : vector<8x128xf32>
    %cst_23 = arith.constant 1.000000e+00 : f32
    %36 = vector.broadcast %cst_23 : f32 to vector<8x128xf32>
    %37 = arith.addf %36, %33 : vector<8x128xf32>
    %38 = arith.divf %35, %37 : vector<8x128xf32>
    %cst_24 = arith.constant 0.000000e+00 : f32
    %39 = vector.broadcast %cst_24 : f32 to vector<8x128xf32>
    %40 = arith.cmpf oge, %29, %39 : vector<8x128xf32>
    %cst_25 = arith.constant 0.000000e+00 : f32
    %41 = vector.broadcast %cst_25 : f32 to vector<8x128xf32>
    %42 = arith.subf %41, %38 : vector<8x128xf32>
    %43 = arith.select %40, %38, %42 : vector<8x128xi1>, vector<8x128xf32>
    %cst_26 = arith.constant 0.693147182 : f32
    %44 = vector.broadcast %cst_26 : f32 to vector<8x128xf32>
    %45 = arith.subf %44, %30 : vector<8x128xf32>
    %46 = math.log1p %33 : vector<8x128xf32>
    %47 = arith.subf %45, %46 : vector<8x128xf32>
    %cst_27 = arith.constant 2.000000e+00 : f32
    %48 = vector.broadcast %cst_27 : f32 to vector<8x128xf32>
    %49 = arith.mulf %48, %47 : vector<8x128xf32>
    %cst_28 = arith.constant -5.000000e-01 : f32
    %50 = vector.broadcast %cst_28 : f32 to vector<8x128xf32>
    %51 = arith.mulf %50, %27 : vector<8x128xf32>
    %52 = arith.mulf %51, %27 : vector<8x128xf32>
    %53 = arith.subf %52, %25 : vector<8x128xf32>
    %cst_29 = arith.constant 0.918938517 : f32
    %54 = vector.broadcast %cst_29 : f32 to vector<8x128xf32>
    %55 = arith.subf %53, %54 : vector<8x128xf32>
    %56 = arith.subf %55, %49 : vector<8x128xf32>
    %57 = tpu.iota {dimensions = array<i32: 1>} : vector<8x128xi32>
    %c4_i32 = arith.constant 4 : i32
    %58 = vector.broadcast %c4_i32 : i32 to vector<8x128xi32>
    %59 = arith.cmpi slt, %57, %58 : vector<8x128xi32>
    %cst_30 = arith.constant 0.000000e+00 : f32
    %60 = vector.broadcast %cst_30 : f32 to vector<8x128xf32>
    %61 = arith.select %59, %56, %60 : vector<8x128xi1>, vector<8x128xf32>
    %cst_31 = arith.constant dense<0.000000e+00> : vector<8xf32>
    %62 = vector.multi_reduction <add>, %61, %cst_31 [1] : vector<8x128xf32> to vector<8xf32>
    %63 = vector.shape_cast %62 : vector<8xf32> to vector<8x1xf32>
    %c4_i32_32 = arith.constant 4 : i32
    %64 = vector.broadcast %c4_i32_32 : i32 to vector<8x128xi32>
    %65 = arith.cmpi eq, %57, %64 : vector<8x128xi32>
    %66 = vector.shape_cast %63 : vector<8x1xf32> to vector<8x1xf32>
    %67 = vector.broadcast %66 : vector<8x1xf32> to vector<8x128xf32>
    %68 = arith.select %65, %67, %43 : vector<8x128xi1>, vector<8x128xf32>
    %c0_33 = arith.constant 0 : index
    %c0_34 = arith.constant 0 : index
    %69 = vector.load %arg9[%c0_33, %c0_34] : memref<8x128xf32, #tpu.memory_space<vmem>>, vector<8x128xf32>
    tpu.vector_store %arg9[%c0_33, %c0_34], %68 {strides = array<i32>} : memref<8x128xf32, #tpu.memory_space<vmem>>, vector<8x128xf32>,
    return
  }
  func.func @transform_0(%arg0: i32) -> (i32, i32) {
    %c0_i32 = arith.constant 0 : i32
    %c0_i32_0 = arith.constant 0 : i32
    return %arg0, %c0_i32 : i32, i32
  }
  func.func @transform_1(%arg0: i32) -> (i32, i32) {
    %c0_i32 = arith.constant 0 : i32
    %c0_i32_0 = arith.constant 0 : i32
    return %arg0, %c0_i32 : i32, i32
  }
  func.func @transform_2(%arg0: i32) -> (i32, i32) {
    %c0_i32 = arith.constant 0 : i32
    %c0_i32_0 = arith.constant 0 : i32
    %c0_i32_1 = arith.constant 0 : i32
    return %c0_i32, %c0_i32_0 : i32, i32
  }
  func.func @transform_3(%arg0: i32) -> (i32, i32) {
    %c0_i32 = arith.constant 0 : i32
    %c0_i32_0 = arith.constant 0 : i32
    %c0_i32_1 = arith.constant 0 : i32
    return %c0_i32, %c0_i32_0 : i32, i32
  }
  func.func @transform_4(%arg0: i32) -> (i32, i32) {
    %c0_i32 = arith.constant 0 : i32
    %c0_i32_0 = arith.constant 0 : i32
    %c0_i32_1 = arith.constant 0 : i32
    return %c0_i32, %c0_i32_0 : i32, i32
  }
  func.func @transform_5(%arg0: i32) -> (i32, i32) {
    %c0_i32 = arith.constant 0 : i32
    %c0_i32_0 = arith.constant 0 : i32
    %c0_i32_1 = arith.constant 0 : i32
    return %c0_i32, %c0_i32_0 : i32, i32
  }
  func.func @transform_6(%arg0: i32) -> (i32, i32) {
    %c0_i32 = arith.constant 0 : i32
    %c0_i32_0 = arith.constant 0 : i32
    %c0_i32_1 = arith.constant 0 : i32
    return %c0_i32, %c0_i32_0 : i32, i32
  }
  func.func @transform_7(%arg0: i32) -> (i32, i32) {
    %c0_i32 = arith.constant 0 : i32
    %c0_i32_0 = arith.constant 0 : i32
    %c0_i32_1 = arith.constant 0 : i32
    return %c0_i32, %c0_i32_0 : i32, i32
  }
  func.func @transform_8(%arg0: i32) -> (i32, i32) {
    %c0_i32 = arith.constant 0 : i32
    %c0_i32_0 = arith.constant 0 : i32
    return %arg0, %c0_i32 : i32, i32
  }
}

</mosaic_0001>

<bundles_post_ra>
// kernel: tpu_custom_call.1
= control target key start
LH: loop header
LB: loop body
LE: loop exit
PB: predicated region body
PF: predicated region fallthrough
CT: control target
= control target key end

     0   :  { %13 = vsyncpa [#allocation3], 0  ;;  %s880_s0 = inlined_call_operand.hbm [shape: f32[8,16], index: 0, kind: input, shape index: {}]   ;;  %s881_s1 = inlined_call_operand.hbm [shape: f32[8,128], index: 1, kind: input, shape index: {}]   ;;  %s882_s2 = inlined_call_operand.hbm [shape: f32[16,128], index: 2, kind: input, shape index: {}]   ;;  %s883_s3 = inlined_call_operand.vmem [shape: f32[1,128], index: 3, kind: input, shape index: {}]   ;;  %s884_s4 = inlined_call_operand.hbm [shape: f32[128,128], index: 4, kind: input, shape index: {}]   ;;  %s885_s5 = inlined_call_operand.vmem [shape: f32[1,128], index: 5, kind: input, shape index: {}]   ;;  %s886_s6 = inlined_call_operand.hbm [shape: f32[128,256], index: 6, kind: input, shape index: {}]   ;;  %s887_s7 = inlined_call_operand.vmem [shape: f32[1,256], index: 7, kind: input, shape index: {}]   ;;  %s888_s8 = inlined_call_operand.hbm [shape: f32[8,128], index: 8, kind: output, shape index: {}]  }
   0x1   :  { %14 = vsyncpa [#allocation6], 0 }
   0x2   :  { %15 = vsyncpa [#allocation9], 0 }
   0x3   :  { %16 = vsyncpa [#allocation4], 0  ;;  %s735_s27 = smov [#allocation5]   ;;  %s595_s9 = scalar_lea.hbm %s881_s1, 128 }
   0x4   :  { %s33_s28 = sshll.u32 %s735_s27, 4  ;;  %p596_p0 = scmp.ne.s32.totalorder %s881_s1, %s595_s9  ;;  %s34_s28 = int_to_ptr.vmem [resolvable:$true] %s33_s28 }
   0x5   :  { %p599_p1 = scmp.lt.u32.totalorder %s595_s9, %s881_s1 }
   0x7   :  { %p601_p2 = pnand %p599_p1, %p596_p0 }
   0x9   :  { %604 = shalt.err (!%p601_p2)
}
   0xa   :  { %s605_s14 = scalar_lea.vmem %s34_s28, 128  ;;  %p610_p4 = scmp.lt.s32.totalorder %s34_s28, %s34_s28 }
   0xb   :  { %p606_p3 = scmp.ne.s32.totalorder %s34_s28, %s605_s14  ;;  %p611_p5 = scmp.lt.s32.totalorder %s605_s14, %s605_s14 }
   0xd   :  { %p612_p6 = por %p611_p5, %p610_p4 }
   0xf   :  { %p613_p7 = pnand %p612_p6, %p606_p3 }
  0x11   :  { %616 = shalt.err (!%p613_p7)
}
  0x12   :  { %36 = dma.hbm_to_vmem [thread:$0]  %s881_s1, 128, %s34_s28, [#allocation6]  }
  0x13   :  { %s736_s17 = smov [#allocation8]   ;;  %s737_s19 = smov [#allocation2]  }
  0x14   :  { %s56_s18 = sshll.u32 %s736_s17, 4  ;;  %s23_s20 = sshll.u32 %s737_s19, 4  ;;  %s57_s18 = int_to_ptr.vmem [resolvable:$true] %s56_s18  ;;  %s24_s20 = int_to_ptr.vmem [resolvable:$true] %s23_s20 }
  0x15   :  { %s617_s23 = scalar_lea.hbm %s884_s4, 2048 }
  0x16   :  { %p618_p8 = scmp.ne.s32.totalorder %s884_s4, %s617_s23  ;;  %p621_p9 = scmp.lt.u32.totalorder %s617_s23, %s884_s4 }
  0x18   :  { %p623_p10 = pnand %p621_p9, %p618_p8 }
  0x1a   :  { %626 = shalt.err (!%p623_p10)
}
  0x1b   :  { %s627_s1 = scalar_lea.vmem %s57_s18, 2048  ;;  %p632_p12 = scmp.lt.s32.totalorder %s57_s18, %s57_s18 }
  0x1c   :  { %p628_p11 = scmp.ne.s32.totalorder %s57_s18, %s627_s1  ;;  %p633_p13 = scmp.lt.s32.totalorder %s627_s1, %s627_s1 }
  0x1e   :  { %p634_p0 = por %p633_p13, %p632_p12 }
  0x20   :  { %p635_p1 = pnand %p634_p0, %p628_p11 }
  0x22   :  { %638 = shalt.err (!%p635_p1)
}
  0x23   :  { %s738_s28 = smov 128   ;;  %s739_s29 = smov 8  }
  0x24   :  { %62 = dma.hbm_to_vmem [thread:$0]  %s884_s4, 2048, %s57_s18, [#allocation9], %s738_s28, %s738_s28, %s739_s29  }
  0x25   :  { %s639_s12 = scalar_lea.hbm %s880_s0, 128 }
  0x26   :  { %p640_p2 = scmp.ne.s32.totalorder %s880_s0, %s639_s12  ;;  %p643_p3 = scmp.lt.u32.totalorder %s639_s12, %s880_s0 }
  0x28   :  { %p645_p4 = pnand %p643_p3, %p640_p2 }
  0x2a   :  { %648 = shalt.err (!%p645_p4)
}
  0x2b   :  { %s649_s17 = scalar_lea.vmem %s24_s20, 128  ;;  %p654_p6 = scmp.lt.s32.totalorder %s24_s20, %s24_s20 }
  0x2c   :  { %p650_p5 = scmp.ne.s32.totalorder %s24_s20, %s649_s17  ;;  %p655_p7 = scmp.lt.s32.totalorder %s649_s17, %s649_s17 }
  0x2e   :  { %p656_p8 = por %p655_p7, %p654_p6 }
  0x30   :  { %p657_p9 = pnand %p656_p8, %p650_p5 }
  0x32   :  { %660 = shalt.err (!%p657_p9)
}
  0x33   :  { %26 = dma.hbm_to_vmem [thread:$0]  %s880_s0, 128, %s24_s20, [#allocation3]  }
  0x34   :  { %s740_s19 = smov [#allocation7]   ;;  %s741_s22 = smov [#allocation10]  }
  0x35   :  { %s42_s21 = sshll.u32 %s740_s19, 4  ;;  %s70_s23 = sshll.u32 %s741_s22, 4  ;;  %s43_s21 = int_to_ptr.vmem [resolvable:$true] %s42_s21  ;;  %s71_s23 = int_to_ptr.vmem [resolvable:$true] %s70_s23 }
  0x36   :  { %s661_s26 = scalar_lea.hbm %s882_s2, 256 }
  0x37   :  { %p662_p10 = scmp.ne.s32.totalorder %s882_s2, %s661_s26  ;;  %p665_p11 = scmp.lt.u32.totalorder %s661_s26, %s882_s2 }
  0x39   :  { %p667_p12 = pnand %p665_p11, %p662_p10 }
  0x3b   :  { %670 = shalt.err (!%p667_p12)
}
  0x3c   :  { %s671_s0 = scalar_lea.vmem %s43_s21, 256  ;;  %p676_p0 = scmp.lt.s32.totalorder %s43_s21, %s43_s21 }
  0x3d   :  { %p672_p13 = scmp.ne.s32.totalorder %s43_s21, %s671_s0  ;;  %p677_p1 = scmp.lt.s32.totalorder %s671_s0, %s671_s0 }
  0x3f   :  { %p678_p2 = por %p677_p1, %p676_p0 }
  0x41   :  { %p679_p3 = pnand %p678_p2, %p672_p13 }
  0x43   :  { %682 = shalt.err (!%p679_p3)
}
  0x44   :  { %48 = dma.hbm_to_vmem [thread:$0]  %s882_s2, 256, %s43_s21, [#allocation6], %s738_s28, %s738_s28, %s739_s29  }
  0x45   :  { %s683_s13 = scalar_lea.hbm %s886_s6, 4096 }
  0x46   :  { %p684_p4 = scmp.ne.s32.totalorder %s886_s6, %s683_s13  ;;  %p687_p5 = scmp.lt.u32.totalorder %s683_s13, %s886_s6 }
  0x48   :  { %p689_p6 = pnand %p687_p5, %p684_p4 }
  0x4a   :  { %692 = shalt.err (!%p689_p6)
}
  0x4b   :  { %s693_s4 = scalar_lea.vmem %s71_s23, 4096  ;;  %p698_p8 = scmp.lt.s32.totalorder %s71_s23, %s71_s23 }
  0x4c   :  { %p694_p7 = scmp.ne.s32.totalorder %s71_s23, %s693_s4  ;;  %p699_p9 = scmp.lt.s32.totalorder %s693_s4, %s693_s4 }
  0x4e   :  { %p700_p10 = por %p699_p9, %p698_p8 }
  0x50   :  { %p701_p11 = pnand %p700_p10, %p694_p7 }
  0x52   :  { %704 = shalt.err (!%p701_p11)
}
  0x53   :  { %s742_s2 = smov 256   ;;  %s743_s28 = smov 16  }
  0x54   :  { %76 = dma.hbm_to_vmem [thread:$0]  %s886_s6, 4096, %s71_s23, [#allocation9], %s742_s2, %s742_s2, %s743_s28  }
  0x55   :  { %727 = dma.done.wait [#allocation3], 128  }
  0x56   :  { %728 = vsyncadd [#allocation3], 4294967168 }
  0x57   :  { %729 = dma.done.wait [#allocation6], 384  }
  0x58   :  { %730 = vsyncadd [#allocation6], 4294966912 }
  0x59   :  { %731 = dma.done.wait [#allocation9], 6144  }
  0x5a   :  { %732 = vsyncadd [#allocation9], 4294961152  ;;  %v744_v0 = vmov 0.0|0.0   ;;  %vm745_vm0 = vmmov 0   ;;  %v746_v1 = vmov 0.0   ;;  %v95_v2 = vld [vmem:[#allocation7] sm:$0xff] }
  0x5b   :  { %515 = vmatprep.subr.bf16.mxu0 %v744_v0  ;;  %477 = vmatprep.mubr.msk.f32.mxu0 %vm745_vm0, %v746_v1  ;;  %v96_v3 = vld [vmem:[#allocation7 + $0x8] sm:$0xff]  ;;  %v179_v5 = vld [vmem:[#allocation8] sm:$0xff]  ;;  %v180_v6 = vld [vmem:[#allocation8 + $0x8] sm:$0xff]  ;;  %vm104_vm1 = vcmask 130048  }
  0x5c   :  { %518 = vmatprep.subr.bf16.mxu1 %v744_v0  ;;  %512 = vmatprep.mubr.msk.f32.mxu1 %vm745_vm0, %v746_v1  ;;  %v516_v4 = vpack.c.bf16 %v96_v3, %v95_v2  ;;  %v181_v7 = vld [vmem:[#allocation8 + $0x10] sm:$0xff]  ;;  %v519_v8 = vpack.c.bf16 %v180_v6, %v179_v5  ;;  %v182_v9 = vld [vmem:[#allocation8 + $0x18] sm:$0xff]  ;;  %v94_v10 = vld [vmem:[#allocation2] sm:$0xff] }
  0x5d   :  { %v522_v11 = vpack.c.bf16 %v182_v9, %v181_v7  ;;  %v183_v12 = vld [vmem:[#allocation8 + $0x20] sm:$0xff]  ;;  %v184_v13 = vld [vmem:[#allocation8 + $0x28] sm:$0xff]  ;;  %v185_v15 = vld [vmem:[#allocation8 + $0x30] sm:$0xff] }
  0x5e   :  { %517 = vmatpush3.bf16.msra.mxu0 %v516_v4  ;;  %520 = vmatpush3.bf16.msra.mxu1 %v519_v8  ;;  %v525_v14 = vpack.c.bf16 %v184_v13, %v183_v12  ;;  %v186_v16 = vld [vmem:[#allocation8 + $0x38] sm:$0xff]  ;;  %v187_v18 = vld [vmem:[#allocation8 + $0x40] sm:$0xff]  ;;  %v188_v19 = vld [vmem:[#allocation8 + $0x48] sm:$0xff] }
  0x5f   :  { %521 = vmatprep.subr.bf16.mxu1 %v744_v0  ;;  %v528_v17 = vpack.c.bf16 %v186_v16, %v185_v15  ;;  %v531_v20 = vpack.c.bf16 %v188_v19, %v187_v18  ;;  %v189_v21 = vld [vmem:[#allocation8 + $0x50] sm:$0xff]  ;;  %v190_v22 = vld [vmem:[#allocation8 + $0x58] sm:$0xff]  ;;  %v191_v24 = vld [vmem:[#allocation8 + $0x60] sm:$0xff] }
  0x60   :  { %v534_v23 = vpack.c.bf16 %v190_v22, %v189_v21  ;;  %v192_v25 = vld [vmem:[#allocation8 + $0x68] sm:$0xff]  ;;  %v193_v27 = vld [vmem:[#allocation8 + $0x70] sm:$0xff]  ;;  %v194_v28 = vld [vmem:[#allocation8 + $0x78] sm:$0xff] }
  0x61   :  { %478 = vmatmul.mubr.msk.f32.vlgmr.msra.gmra.mrb[0].mxu0 %vm104_vm1, %v94_v10  ;;  %v537_v26 = vpack.c.bf16 %v192_v25, %v191_v24  ;;  %v540_v29 = vpack.c.bf16 %v194_v28, %v193_v27  ;;  %v274_v30 = vld [vmem:[#allocation10 + $0x8] sm:$0xff]  ;;  %v276_v31 = vld [vmem:[#allocation10 + $0x18] sm:$0xff]  ;;  %v273_v32 = vld [vmem:[#allocation10] sm:$0xff]  ;;  %v307_v24 = vlaneseq }
  0x62   :  { %381 = vmatprep.mubr.f32.mxu0 %v746_v1  ;;  %523 = vmatpush3.bf16.msra.mxu1 %v522_v11  ;;  %v542_v33 = vpack.c.bf16 %v276_v31, %v274_v30  ;;  %v275_v34 = vld [vmem:[#allocation10 + $0x10] sm:$0xff]  ;;  %v278_v35 = vld [vmem:[#allocation10 + $0x28] sm:$0xff]  ;;  %v280_v36 = vld [vmem:[#allocation10 + $0x38] sm:$0xff] }
  0x63   :  { %524 = vmatprep.subr.bf16.mxu1 %v744_v0  ;;  %v544_v37 = vpack.c.bf16 %v275_v34, %v273_v32  ;;  %v546_v38 = vpack.c.bf16 %v280_v36, %v278_v35  ;;  %v277_v39 = vld [vmem:[#allocation10 + $0x20] sm:$0xff]  ;;  %v279_v40 = vld [vmem:[#allocation10 + $0x30] sm:$0xff]  ;;  %v282_v41 = vld [vmem:[#allocation10 + $0x48] sm:$0xff]  ;;  %v308_v25 = vshrl.u32 %v307_v24, 7 }
  0x64   :  { %543 = vmatprep.subr.bf16.mxu0 %v542_v33  ;;  %v284_v42 = vld [vmem:[#allocation10 + $0x58] sm:$0xff]  ;;  %v548_v43 = vpack.c.bf16 %v279_v40, %v277_v39  ;;  %v281_v45 = vld [vmem:[#allocation10 + $0x40] sm:$0xff]  ;;  %v283_v46 = vld [vmem:[#allocation10 + $0x50] sm:$0xff] }
  0x65   :  { %545 = vmatpush1.bf16.msra.mxu0 %v544_v37  ;;  %v550_v44 = vpack.c.bf16 %v284_v42, %v282_v41  ;;  %v286_v47 = vld [vmem:[#allocation10 + $0x68] sm:$0xff]  ;;  %v288_v48 = vld [vmem:[#allocation10 + $0x78] sm:$0xff]  ;;  %v552_v49 = vpack.c.bf16 %v283_v46, %v281_v45  ;;  %v285_v51 = vld [vmem:[#allocation10 + $0x60] sm:$0xff]  ;;  %v309_v35 = vsub.s32 0, %v308_v25 }
  0x66   :  { %526 = vmatpush3.bf16.msra.mxu1 %v525_v14  ;;  %547 = vmatprep.subr.bf16.mxu0 %v546_v38  ;;  %v554_v50 = vpack.c.bf16 %v288_v48, %v286_v47  ;;  %v287_v52 = vld [vmem:[#allocation10 + $0x70] sm:$0xff]  ;;  %v290_v53 = vld [vmem:[#allocation10 + $0x88] sm:$0xff]  ;;  %v292_v54 = vld [vmem:[#allocation10 + $0x98] sm:$0xff] }
  0x67   :  { %527 = vmatprep.subr.bf16.mxu1 %v744_v0  ;;  %v556_v55 = vpack.c.bf16 %v287_v52, %v285_v51  ;;  %v558_v56 = vpack.c.bf16 %v292_v54, %v290_v53  ;;  %v289_v57 = vld [vmem:[#allocation10 + $0x80] sm:$0xff]  ;;  %v291_v58 = vld [vmem:[#allocation10 + $0x90] sm:$0xff]  ;;  %v294_v59 = vld [vmem:[#allocation10 + $0xa8] sm:$0xff] }
  0x68   :  { %v296_v60 = vld [vmem:[#allocation10 + $0xb8] sm:$0xff]  ;;  %v560_v61 = vpack.c.bf16 %v291_v58, %v289_v57  ;;  %v293_v63 = vld [vmem:[#allocation10 + $0xa0] sm:$0xff]  ;;  %v298_v1 = vld [vmem:[#allocation10 + $0xc8] sm:$0xff] }
  0x69   :  { %549 = vmatpush1.bf16.msra.mxu0 %v548_v43  ;;  %v562_v62 = vpack.c.bf16 %v296_v60, %v294_v59  ;;  %v300_v2 = vld [vmem:[#allocation10 + $0xd8] sm:$0xff]  ;;  %v297_v5 = vld [vmem:[#allocation10 + $0xc0] sm:$0xff]  ;;  %v299_v6 = vld [vmem:[#allocation10 + $0xd0] sm:$0xff] }
  0x6a   :  { %529 = vmatpush3.bf16.msra.mxu1 %v528_v17  ;;  %551 = vmatprep.subr.bf16.mxu0 %v550_v44  ;;  %v566_v4 = vpack.c.bf16 %v300_v2, %v298_v1  ;;  %v568_v7 = vpack.c.bf16 %v299_v6, %v297_v5  ;;  %v449_v8 = vld [vmem:[%s883_s3] ss:$0 sm:$0xff]  ;;  %v302_v13 = vld [vmem:[#allocation10 + $0xe8] sm:$0xff]  ;;  %v304_v14 = vld [vmem:[#allocation10 + $0xf8] sm:$0xff] }
  0x6b   :  { %530 = vmatprep.subr.bf16.mxu1 %v744_v0  ;;  %v570_v15 = vpack.c.bf16 %v304_v14, %v302_v13  ;;  %v301_v16 = vld [vmem:[#allocation10 + $0xe0] sm:$0xff]  ;;  %v303_v17 = vld [vmem:[#allocation10 + $0xf0] sm:$0xff]  ;;  %v392_v38 = vld [vmem:[#allocation5] sm:$0xff] }
  0x6c   :  { %v572_v18 = vpack.c.bf16 %v303_v17, %v301_v16  ;;  %v451_v19 = vld [vmem:[%s885_s5] ss:$0 sm:$0xff]  ;;  %v418_v48 = vmul.f32 -0.5, %v392_v38  ;;  %s747_s5 = smov [#allocation11]  }
  0x6d   :  { %553 = vmatpush1.bf16.msra.mxu0 %v552_v49  ;;  %v305_v27 = vld [vmem:[%s887_s7] sm:$0x3]  ;;  %s438_s7 = sshll.u32 %s747_s5, 4  ;;  %s439_s7 = int_to_ptr.vmem [resolvable:$true] %s438_s7 }
  0x6e   :  { %532 = vmatpush3.bf16.msra.mxu1 %v531_v20  ;;  %555 = vmatprep.subr.bf16.mxu0 %v554_v50  ;;  %v310_v36 = vrot.slane %v305_v27, %v309_v35  ;;  %v419_v50 = vmul.f32 %v418_v48, %v392_v38  ;;  %s705_s24 = scalar_lea.vmem %s439_s7, 128  ;;  %p710_p13 = scmp.lt.s32.totalorder %s439_s7, %s439_s7 }
  0x6f   :  { %533 = vmatprep.subr.bf16.mxu1 %v744_v0  ;;  %p706_p12 = scmp.ne.s32.totalorder %s439_s7, %s705_s24  ;;  %p711_p0 = scmp.lt.s32.totalorder %s705_s24, %s705_s24 }
  0x71   :  { %557 = vmatpush1.bf16.msra.mxu0 %v556_v55  ;;  %p712_p1 = por %p711_p0, %p710_p13 }
  0x72   :  { %535 = vmatpush3.bf16.msra.mxu1 %v534_v23  ;;  %559 = vmatprep.subr.bf16.mxu0 %v558_v56 }
  0x73   :  { %536 = vmatprep.subr.bf16.mxu1 %v744_v0  ;;  %p713_p2 = pnand %p712_p1, %p706_p12 }
  0x75   :  { %561 = vmatpush1.bf16.msra.mxu0 %v560_v61 }
  0x76   :  { %538 = vmatpush3.bf16.msra.mxu1 %v537_v26  ;;  %563 = vmatprep.subr.bf16.mxu0 %v562_v62  ;;  %v313_v26 = vsub.s32 1, %v308_v25  ;;  %v424_v62 = vand.u32 127, %v307_v24 }
  0x77   :  { %539 = vmatprep.subr.bf16.mxu1 %v744_v0  ;;  %v295_v0 = vld [vmem:[#allocation10 + $0xb0] sm:$0xff] }
  0x78   :  { %v564_v3 = vpack.c.bf16 %v295_v0, %v293_v63  ;;  %v314_v28 = vrot.slane %v305_v27, %v313_v26  ;;  %vm425_vm4 = vcmp.lt.s32.totalorder %v424_v62, 4  ;;  %vm429_vm5 = vcmp.eq.s32.totalorder %v424_v62, 4 }
  0x7a   :  { %541 = vmatpush3.bf16.msra.mxu1 %v540_v29  ;;  %565 = vmatpush1.bf16.msra.mxu0 %v564_v3 }
  0x7b   :  { %567 = vmatprep.subr.bf16.mxu0 %v566_v4 }
  0x7e   :  { %569 = vmatpush1.bf16.msra.mxu0 %v568_v7 }
  0x7f   :  { %571 = vmatprep.subr.bf16.mxu0 %v570_v15 }
  0x82   :  { %573 = vmatpush1.bf16.msra.mxu0 %v572_v18 }
 0x134   :  { %v174_v9 = vpop.f32.mrb[0].mxu0 }
 0x135   :  { %v175_v10 = vadd.f32 %v449_v8, %v174_v9  ;;  %v479_v11 = vpop.f32.mrb[1].mxu0 }
 0x137   :  { %v178_v12 = vmax.f32 %v175_v10, 0.0 }
 0x139   :  { %513 = vmatmul.mubr.f32.vlgmr.msra.gmra.mrb[0].mxu1 %v178_v12 }
 0x20c   :  { %v268_v20 = vpop.f32.mrb[0].mxu1 }
 0x20d   :  { %v269_v21 = vadd.f32 %v451_v19, %v268_v20  ;;  %v514_v22 = vpop.f32.mrb[1].mxu1 }
 0x20f   :  { %v272_v23 = vmax.f32 %v269_v21, 0.0 }
 0x211   :  { %382 = vmatmul.mubr.f32.vlgmr.msra.gmra.mrb[2].mxu0 %v272_v23 }
 0x2e4   :  { %v383_v29 = vpop.f32.mrb[2].mxu0 }
 0x2e5   :  { %v385_v30 = vpop.f32.mrb[3].mxu0  ;;  %v384_v39 = vadd.f32 %v383_v29, %v310_v36 }
 0x2e6   :  { %v386_v31 = vadd.f32 %v385_v30, %v314_v28 }
 0x2e8   :  { %v388_v32 = vmax.f32 %v386_v31, -20.0 }
 0x2ea   :  { %v389_v33 = vmin.f32 %v388_v32, 2.0 }
 0x2ec   :  { %v390_v34 = vmul.f32 1.442695, %v389_v33  ;;  %v420_v58 = vsub.f32 %v419_v50, %v389_v33 }
 0x2ee   :  { %587 = vpow2.f32 %v390_v34  ;;  %v452_v2 = vadd.f32 -0.9189385, %v420_v58 }
 0x2f8   :  { %v588_v37 = vpop.eup %587 }
 0x2f9   :  { %v393_v40 = vmul.f32 %v588_v37, %v392_v38 }
 0x2fb   :  { %v394_v41 = vadd.f32 %v393_v40, %v384_v39 }
 0x2fd   :  { %v395_v42 = vand.u32 2147483647, %v394_v41  ;;  %vm403_vm3 = vcmp.ge.f32.partialorder %v394_v41, 0.0 }
 0x2ff   :  { %v396_v43 = vmul.f32 -2.0, %v395_v42  ;;  %v406_v59 = vsub.f32 0.6931472, %v395_v42 }
 0x301   :  { %v397_v44 = vmul.f32 1.442695, %v396_v43 }
 0x303   :  { %589 = vpow2.f32 %v397_v44 }
 0x30d   :  { %v590_v45 = vpop.eup %589 }
 0x30e   :  { %v400_v46 = vadd.f32 1.0, %v590_v45  ;;  %v410_v47 = vmul.f32 -0.5, %v590_v45  ;;  %v413_v51 = vand.u32 2147483647, %v590_v45  ;;  %v399_v52 = vsub.f32 1.0, %v590_v45 }
 0x310   :  { %591 = vrcp.f32 %v400_v46  ;;  %v411_v49 = vadd.f32 1.0, %v410_v47  ;;  %vm414_vm2 = vcmp.lt.f32.partialorder %v413_v51, 0.0004427343 }
 0x311   :  { %593 = vlog2.f32 %v400_v46 }
 0x312   :  { %v412_v57 = vmul.f32 %v590_v45, %v411_v49 }
 0x31a   :  { %v592_v53 = vpop.eup %591 }
 0x31b   :  { %v594_v54 = vpop.eup %593  ;;  %v402_v55 = vmul.f32 %v592_v53, %v399_v52 }
 0x31c   :  { %v409_v56 = vmul.f32 0.6931472, %v594_v54 }
 0x31d   :  { %v404_v60 = vsub.f32 0.0, %v402_v55 }
 0x31e   :  { %v415_v61 = vsel %vm414_vm2, %v412_v57, %v409_v56 }
 0x31f   :  { %v416_v63 = vsub.f32 %v406_v59, %v415_v61  ;;  %v405_v0 = vsel %vm403_vm3, %v402_v55, %v404_v60 }
 0x321   :  { %v417_v1 = vmul.f32 2.0, %v416_v63 }
 0x323   :  { %v422_v3 = vsub.f32 %v452_v2, %v417_v1 }
 0x325   :  { %v426_v4 = vsel %vm425_vm4, %v422_v3, 0.0 }
 0x326   :  { %427 = vadd.xlane.f32.xlu0 %v426_v4 }
 0x3b3   :  { %v428_v5 = vpop.xlane.xlu0 %427 }
 0x3b4   :  { %v430_v6 = vsel %vm429_vm5, %v428_v5, %v405_v0 }
 0x3b5   :  { %431 = vst [vmem:[#allocation11] sm:$0xff] %v430_v6 }
 0x3b6   :  { %716 = shalt.err (!%p713_p2)
}
 0x3b7   :  { %s717_s27 = scalar_lea.hbm %s888_s8, 128 }
 0x3b8   :  { %p718_p3 = scmp.ne.s32.totalorder %s888_s8, %s717_s27  ;;  %p721_p4 = scmp.lt.u32.totalorder %s717_s27, %s888_s8 }
 0x3ba   :  { %p723_p5 = pnand %p721_p4, %p718_p3 }
 0x3bc   :  { %726 = shalt.err (!%p723_p5)
}
 0x3bd   :  { %441 = dma.vmem_to_hbm [thread:$0]  %s439_s7, 128, %s888_s8, [#allocation4]  }
 0x3be   :  { %733 = dma.done.wait [#allocation4], 128  }
 0x3bf   :  { %734 = vsyncadd [#allocation4], 4294967168 }
 0x3c0   :  { %445 = vsyncpa [#allocation3], 1 }
 0x3c1   :  { %446 = vsyncpa [#allocation6], 1 }
 0x3c2   :  { %447 = vsyncpa [#allocation9], 1 }
 0x3c3   :  { %448 = vsyncpa [#allocation4], 1 }

</bundles_post_ra>
